<compile_context>
chip_gen: v5e
topology: v5e:2x2
jax: 0.10.0
libtpu: 0.0.40
codegen_flags: <defaults>
</compile_context>

<pallas_src>
import math

import jax
import jax.numpy as jnp
from jax import lax
from jax.experimental import pallas as pl
from jax.experimental.pallas import tpu as pltpu


_SQRT_2_OVER_PI = math.sqrt(2.0 / math.pi)
_INV_SQRT2 = 1.0 / math.sqrt(2.0)


def _make_kernel(activation, compute_dtype):
    def kernel(x_ref, w_ref, b_ref, o_ref):
        # Cast x to the MXU compute dtype in-kernel (no wrapper-side HBM pass).
        x = x_ref[...].astype(compute_dtype)          # (tm, K)
        w = w_ref[...]                                # (K, tn)
        y = jnp.dot(x, w, preferred_element_type=jnp.float32) + b_ref[...]  # f32 acc + f32 bias
        if activation == "gelu_tanh":
            # tanh lowers to the EUP slot -> far cheaper than the ~20-op f32 erf
            # polynomial on the VPU (the binding VLIW slot on v6e/v7x for BERT-sized K).
            inner = _SQRT_2_OVER_PI * (y + 0.044715 * (y * y * y))
            y = 0.5 * y * (1.0 + jnp.tanh(inner))
        else:  # "gelu_erf": exact definition used by BERT's utils.gelu
            y = y * 0.5 * (1.0 + lax.erf(y * _INV_SQRT2))
        o_ref[...] = y.astype(o_ref.dtype)
    return kernel


def _round_up(x, m):
    return ((x + m - 1) // m) * m


def _vmem_capacity_bytes():
    try:
        return int(pltpu.get_tpu_info().vmem_capacity_bytes)
    except Exception:
        return 64 * 1024 * 1024  # conservative fallback (v7x per-TensorCore VMEM)


def _candidate_tns(N):
    cands = [N]
    if N % 128 == 0:
        nblk = N // 128
        for d in range(nblk, 0, -1):
            if nblk % d == 0 and d * 128 not in cands:
                cands.append(d * 128)
    return cands  # descending


def _vmem_need(tm, tn, K, x_bytes, w_bytes, out_bytes, w_bufs):
    x = 2 * tm * K * x_bytes          # double-buffered activation tile (native dtype)
    w = w_bufs * K * tn * w_bytes     # resident weight tile
    b = 2 * tn * 4                    # f32 bias tile (negligible)
    o = 2 * tm * tn * out_bytes       # double-buffered output tile
    tmp = 2 * tm * tn * 4             # f32 matmul result + GELU temporaries
    return x + w + b + o + tmp


def _plan_tiles(M, K, N, tm_req, tn_req, x_bytes, w_bytes, out_bytes, vmem_cap):
    """Pick (tm, tn, weight_buffer_count) fitting the VMEM budget.

    Preference: largest tn (fewest full-x re-reads), then largest tm (fewer grid steps,
    longer MXU runs), then double-buffered weight.
    """
    tm_cap = max(8, min(_round_up(tm_req, 8), _round_up(M, 8)))
    tm_cands = []
    t = tm_cap
    while True:
        tm_cands.append(t)
        if t <= 8:
            break
        t = max(8, _round_up(t // 2, 8))
        if t == tm_cands[-1]:
            break
    tn_cands = [tn_req] if tn_req is not None else _candidate_tns(N)
    for tn in tn_cands:
        for tm in tm_cands:
            for w_bufs in (2, 1):
                if _vmem_need(tm, tn, K, x_bytes, w_bytes, out_bytes, w_bufs) <= vmem_cap:
                    return tm, tn, w_bufs
    # Nothing fits comfortably: minimal tiles, single-buffered weight.
    # TODO(synk): for hidden sizes >> 4096 under v7x's 64 MiB VMEM, add a K grid axis with
    # an f32 VMEM accumulator (pl.when init/finalize) instead of shrinking tm/tn this far.
    return 8, tn_cands[-1], 1


def prepare_bert_intermediate_params(weight_nk, bias_n, *, compute_dtype=jnp.bfloat16):
    """One-time conversion of PyTorch-layout Linear params ([N, K] weight, [N] bias) into
    kernel layout: compute-dtype [K, N] weight and f32 [1, N] bias.  Call once at model
    load time, NOT per forward call (it is a full weight HBM read + write)."""
    w_kn = jnp.asarray(weight_nk).T.astype(compute_dtype)
    b_1n = jnp.asarray(bias_n).reshape(1, -1).astype(jnp.float32)
    return w_kn, b_1n


def bert_intermediate(hidden_states, weight_kn, bias_1n, *, tm=512, tn=None,
                      activation="gelu_erf", out_dtype=None, interpret=False):
    """hidden_states: [B, S, K]; weight_kn: [K, N] (bf16, see prepare_bert_intermediate_params);
    bias_1n: [1, N] (or [N]) f32.  Returns gelu(x @ W + b) with shape [B, S, N].

    activation: "gelu_erf" (exact, matches the PyTorch module) or "gelu_tanh" (EUP fast path).
    out_dtype: defaults to hidden_states.dtype; pass jnp.bfloat16 on v5e/v7x to halve writeback.
    """
    assert activation in ("gelu_erf", "gelu_tanh")
    B, S, K = hidden_states.shape
    Kw, N = weight_kn.shape
    assert K == Kw, "weight must be [hidden_size, intermediate_size]"
    M = B * S
    if out_dtype is None:
        out_dtype = hidden_states.dtype

    # Parameters should already be prepared; only cast if the caller skipped that step.
    if weight_kn.dtype not in (jnp.dtype(jnp.bfloat16), jnp.dtype(jnp.float32)):
        weight_kn = weight_kn.astype(jnp.bfloat16)   # per-call full weight pass: avoid in prod
    bias_1n = jnp.asarray(bias_1n)
    if bias_1n.ndim == 1:
        bias_1n = bias_1n.reshape(1, -1)
    if bias_1n.dtype != jnp.dtype(jnp.float32):
        bias_1n = bias_1n.astype(jnp.float32)
    compute_dtype = weight_kn.dtype

    x2d = hidden_states.reshape(M, K)                # metadata-only reshape, no copy / no cast

    x_bytes = jnp.dtype(hidden_states.dtype).itemsize
    w_bytes = jnp.dtype(compute_dtype).itemsize
    o_bytes = jnp.dtype(out_dtype).itemsize

    phys = _vmem_capacity_bytes()
    vmem_cap = int(phys * 0.85)                      # headroom for Mosaic internal scratch
    if tn is not None:
        assert N % tn == 0 and (tn % 128 == 0 or tn == N), \
            "tn must divide N and be a multiple of 128 (or equal N)"
    tm, tn, w_bufs = _plan_tiles(M, K, N, tm, tn, x_bytes, w_bytes, o_bytes, vmem_cap)

    grid_n = pl.cdiv(N, tn)
    grid_m = pl.cdiv(M, tm)
    # Megacore: if the N axis has a single step, make sure the M axis has >= 2 steps so both
    # v7x TensorCores get work (no-op on single-TC v5e/v6e).
    if grid_n == 1 and grid_m == 1 and M > 8:
        tm = max(8, _round_up(pl.cdiv(M, 2), 8))
        grid_m = pl.cdiv(M, tm)

    if w_bufs == 1:
        # Single-buffer the resident weight: its block index only changes on the slow outer
        # N axis (no steady-state DMA exposure) and this halves the dominant VMEM term,
        # which is what lets tn stay near N under v7x's 64 MiB VMEM.
        w_spec = pl.BlockSpec((K, tn), lambda j, i: (0, j), pipeline_mode=pl.Buffered(1))
    else:
        w_spec = pl.BlockSpec((K, tn), lambda j, i: (0, j))

    need = _vmem_need(tm, tn, K, x_bytes, w_bytes, o_bytes, w_bufs)
    vmem_limit = int(min(phys, max(need + (8 << 20), 32 * 1024 * 1024)))

    out2d = pl.pallas_call(
        _make_kernel(activation, compute_dtype),
        out_shape=jax.ShapeDtypeStruct((M, N), out_dtype),
        grid_spec=pltpu.PrefetchScalarGridSpec(
            num_scalar_prefetch=0,
            grid=(grid_n, grid_m),   # N slow/outer, M fast/inner -> weight tile stays resident
            in_specs=[
                pl.BlockSpec((tm, K), lambda j, i: (i, 0)),   # x tile (native dtype, cast in kernel)
                w_spec,                                        # (K, tn) weight tile
                pl.BlockSpec((1, tn), lambda j, i: (0, j)),    # (1, tn) f32 bias tile
            ],
            out_specs=pl.BlockSpec((tm, tn), lambda j, i: (i, j)),
        ),
        compiler_params=pltpu.CompilerParams(
            dimension_semantics=("parallel", "parallel"),
            vmem_limit_bytes=vmem_limit,
        ),
        interpret=interpret,
    )(x2d, weight_kn, bias_1n)

    return out2d.reshape(B, S, N)


if __name__ == "__main__":
    # Small BertConfig-like sizes: hidden_size=32, intermediate_size=128.
    batch, seq, hidden, intermediate = 2, 8, 32, 128

    key = jax.random.PRNGKey(0)
    kx, kw, kb = jax.random.split(key, 3)

    x = jax.random.normal(kx, (batch, seq, hidden), dtype=jnp.float32)
    # PyTorch Linear layout: weight [N, K] = [intermediate, hidden], bias [N].
    w_nk = jax.random.normal(kw, (intermediate, hidden), dtype=jnp.float32) * 0.02
    b_n = jax.random.normal(kb, (intermediate,), dtype=jnp.float32) * 0.02

    # One-time parameter preparation (hoisted out of the per-call path).
    w_kn, b_1n = prepare_bert_intermediate_params(w_nk, b_n)

    out = bert_intermediate(x, w_kn, b_1n)                           # exact-erf GELU (default)
    out_tanh = bert_intermediate(x, w_kn, b_1n, activation="gelu_tanh")
    jax.block_until_ready(out)
    jax.block_until_ready(out_tanh)
    assert out.shape == (batch, seq, intermediate)
    assert out.dtype == x.dtype

    # Reference 1: matched precision (bf16 operands, f32 accumulation) -> tight tolerance.
    xr = x.reshape(-1, hidden).astype(jnp.bfloat16)
    pre = jnp.dot(xr, w_kn, preferred_element_type=jnp.float32) + b_1n
    ref_erf = (pre * 0.5 * (1.0 + lax.erf(pre / jnp.sqrt(2.0)))).reshape(batch, seq, intermediate)
    assert jnp.allclose(out, ref_erf.astype(out.dtype), atol=1e-4, rtol=1e-4)

    inner = jnp.sqrt(2.0 / jnp.pi) * (pre + 0.044715 * pre ** 3)
    ref_tanh = (0.5 * pre * (1.0 + jnp.tanh(inner))).reshape(batch, seq, intermediate)
    assert jnp.allclose(out_tanh, ref_tanh.astype(out_tanh.dtype), atol=1e-4, rtol=1e-4)

    # Reference 2: full f32 math (PyTorch semantics) -> loose tolerance (bf16 MXU operands).
    pre32 = x.reshape(-1, hidden) @ w_nk.T + b_n
    ref32 = (pre32 * 0.5 * (1.0 + lax.erf(pre32 / jnp.sqrt(2.0)))).reshape(batch, seq, intermediate)
    assert jnp.allclose(out, ref32, atol=1e-2, rtol=1e-2)

    print("KERNEL_OK")
</pallas_src>

<mosaic_0001>
module attributes {stable_mosaic.version = 11 : i64} {
  func.func @kernel(%arg0: i32, %arg1: i32, %arg2: memref<8x32xf32, #tpu.memory_space<vmem>>, %arg3: memref<32x128xbf16, #tpu.memory_space<vmem>>, %arg4: memref<1x128xf32, #tpu.memory_space<vmem>>, %arg5: memref<8x128xf32, #tpu.memory_space<vmem>>) attributes {dimension_semantics = [#tpu.dimension_semantics<parallel>, #tpu.dimension_semantics<parallel>], iteration_bounds = array<i64: 1, 2>, scalar_prefetch = 0 : i64, scratch_operands = 0 : i64, tpu.core_type = #tpu.core_type<tc>, window_params = [{transform_indices = @transform_0, window_bounds = array<i64: 8, 32>}, {transform_indices = @transform_1, window_bounds = array<i64: 32, 128>}, {transform_indices = @transform_2, window_bounds = array<i64: 1, 128>}, {transform_indices = @transform_3, window_bounds = array<i64: 8, 128>}]} {
    %c0 = arith.constant 0 : index
    %c0_0 = arith.constant 0 : index
    %0 = vector.load %arg2[%c0, %c0_0] : memref<8x32xf32, #tpu.memory_space<vmem>>, vector<8x32xf32>
    %1 = arith.truncf %0 : vector<8x32xf32> to vector<8x32xbf16>
    %c0_1 = arith.constant 0 : index
    %c0_2 = arith.constant 0 : index
    %2 = vector.load %arg3[%c0_1, %c0_2] : memref<32x128xbf16, #tpu.memory_space<vmem>>, vector<32x128xbf16>
    %cst = arith.constant dense<0.000000e+00> : vector<8x128xf32>
    %3 = tpu.matmul %1, %2, %cst {dimension_numbers = #tpu.dot_dimension_numbers<[1], [0], [0], [1], [0, 0, 1, 1], [], []>} : vector<8x32xbf16>, vector<32x128xbf16>, vector<8x128xf32> -> vector<8x128xf32>
    %c0_3 = arith.constant 0 : index
    %c0_4 = arith.constant 0 : index
    %4 = vector.load %arg4[%c0_3, %c0_4] : memref<1x128xf32, #tpu.memory_space<vmem>>, vector<1x128xf32>
    %5 = vector.broadcast %4 : vector<1x128xf32> to vector<8x128xf32>
    %6 = arith.addf %3, %5 : vector<8x128xf32>
    %cst_5 = arith.constant 5.000000e-01 : f32
    %7 = vector.broadcast %cst_5 : f32 to vector<8x128xf32>
    %8 = arith.mulf %6, %7 : vector<8x128xf32>
    %cst_6 = arith.constant 0.707106769 : f32
    %9 = vector.broadcast %cst_6 : f32 to vector<8x128xf32>
    %10 = arith.mulf %6, %9 : vector<8x128xf32>
    %11 = math.erf %10 : vector<8x128xf32>
    %cst_7 = arith.constant 1.000000e+00 : f32
    %12 = vector.broadcast %cst_7 : f32 to vector<8x128xf32>
    %13 = arith.addf %12, %11 : vector<8x128xf32>
    %14 = arith.mulf %8, %13 : vector<8x128xf32>
    %c0_8 = arith.constant 0 : index
    %c0_9 = arith.constant 0 : index
    %15 = vector.load %arg5[%c0_8, %c0_9] : memref<8x128xf32, #tpu.memory_space<vmem>>, vector<8x128xf32>
    tpu.vector_store %arg5[%c0_8, %c0_9], %14 {strides = array<i32>} : memref<8x128xf32, #tpu.memory_space<vmem>>, vector<8x128xf32>,
    return
  }
  func.func @transform_0(%arg0: i32, %arg1: i32) -> (i32, i32) {
    %c0_i32 = arith.constant 0 : i32
    %c0_i32_0 = arith.constant 0 : i32
    return %arg1, %c0_i32 : i32, i32
  }
  func.func @transform_1(%arg0: i32, %arg1: i32) -> (i32, i32) {
    %c0_i32 = arith.constant 0 : i32
    %c0_i32_0 = arith.constant 0 : i32
    return %c0_i32, %arg0 : i32, i32
  }
  func.func @transform_2(%arg0: i32, %arg1: i32) -> (i32, i32) {
    %c0_i32 = arith.constant 0 : i32
    %c0_i32_0 = arith.constant 0 : i32
    return %c0_i32, %arg0 : i32, i32
  }
  func.func @transform_3(%arg0: i32, %arg1: i32) -> (i32, i32) {
    %c0_i32 = arith.constant 0 : i32
    return %arg1, %arg0 : i32, i32
  }
}

</mosaic_0001>

<bundles_post_ra>
// kernel: tpu_custom_call.1
= control target key start
LH: loop header
LB: loop body
LE: loop exit
PB: predicated region body
PF: predicated region fallthrough
CT: control target
= control target key end

     0   :  { %8 = vsyncpa [#allocation3], 0  ;;  %s872_s0 = inlined_call_operand.hbm [shape: f32[16,32], index: 0, kind: input, shape index: {}]   ;;  %s873_s1 = inlined_call_operand.hbm [shape: bf16[32,128], index: 1, kind: input, shape index: {}]   ;;  %s874_s2 = inlined_call_operand.vmem [shape: f32[1,128], index: 2, kind: input, shape index: {}]   ;;  %s875_s3 = inlined_call_operand.hbm [shape: f32[16,128], index: 3, kind: output, shape index: {}]  }
   0x1   :  { %10 = vsyncpa [#allocation3 + $0x1], 0 }
   0x2   :  { %11 = vsyncpa [#allocation6], 0 }
   0x3   :  { %12 = vsyncpa [#allocation4], 0 }
   0x4   :  { %14 = vsyncpa [#allocation4 + $0x1], 0  ;;  %s722_s12 = smov 0   ;;  %s724_s13 = smov 0  }
   0x5   :  { %s726_s14 = smov 0   ;;  %s728_s15 = smov 0  }
   0x6   :  { %s730_s16 = smov 0   ;;  %s732_s17 = smov 0  }
   0x7 LB: > { %s445_s18 = sadd.s32 4294967295, %s697_s17   ;;  %p447_p0 = scmp.ge.s32.totalorder %s697_s17, 1  ;;  %s697_s17 = sphi %s732_s17, %s20_s17   ;;  %s693_s16 = sphi %s730_s16, %s886_s16   ;;  %s689_s15 = sphi %s728_s15, %s885_s15   ;;  %s685_s14 = sphi %s726_s14, %s884_s14   ;;  %s681_s13 = sphi %s724_s13, %s883_s13   ;;  %s677_s12 = sphi %s722_s12, %s882_s12  }
   0x8   : > { %p754_p1 = scmp.eq.s32.totalorder %s445_s18, 0  ;;  %p143_p2 = scmp.lt.s32.totalorder %s697_s17, 3 }
   0x9   : > { %s156_s22 = sshll.u32 %s873_s1, 4  ;;  %s699_s24 = smov [#allocation5]   ;;  %s157_s22 = int_to_ptr.hbm [resolvable:$true] %s156_s22 }
   0xa   : > { %p762_p3 = pnand %p447_p0, %p143_p2  ;;  %s158_s25 = sshll.u32 %s699_s24, 4  ;;  %s159_s25 = int_to_ptr.vmem [resolvable:$true] %s158_s25 }
   0xb   : > { %p450_p6 = scmp.ge.s32.totalorder %s697_s17, 2  ;;  %s700_s26 = smov 64  }
   0xc   : > { %p481_p4 = pneg %p762_p3  ;;  %s701_s27 = smov 4  }
   0xd   : > { %s446_s28 = sadd.s32 4294967294, %s697_s17   ;;  %s29_s29 = sadd.s32 1, %s693_s16 }
   0xe   : > { %p482_p5 = pnand %p481_p4, %p754_p1  ;;  %s39_s30 = sadd.s32 1, %s685_s14 }
   0xf   : > { %p30_p7 = scmp.ge.s32.totalorder %s29_s29, 2  ;;  %p46_p8 = scmp.ne.s32.totalorder %s685_s14, %s681_s13 }
  0x10   : > { %484 = dma.hbm_to_vmem [thread:$0]  (!%p482_p5), %s157_s22, 256, %s159_s25, [#allocation6], %s700_s26, %s700_s26, %s701_s27  }
  0x11   : > { %p47_p9 = scmp.eq.s32.totalorder %s697_s17, 0  ;;  %p52_p10 = scmp.ne.s32.totalorder %s681_s13, %s677_s12 }
  0x12   : > { %s888_s29 = smov (%p30_p7, %s29_s29), 0  ;;  %p130_p13 = scmp.eq.s32.totalorder %s445_s18, 1 }
  0x13   : > { %p781_p11 = por %p47_p9, %p46_p8  ;;  %p787_p12 = por %p754_p1, %p52_p10 }
  0x14   : > { %s36_s6 = ssub.s32 %s693_s16, %s888_s29  ;;  %p136_p2 = scmp.eq.s32.totalorder %s446_s28, 1 }
  0x15   : > { %p37_p0 = scmp.eq.s32.totalorder %s36_s6, 0  ;;  %p793_p4 = por %p130_p13, %p46_p8 }
  0x16   : > { %p494_p5 = scmp.lt.s32.totalorder %s697_s17, 2  ;;  %p801_p7 = por %p136_p2, %p52_p10 }
  0x17   : > { %s799_s8 = scalar_select %p37_p0, %s685_s14, %s39_s30  }
  0x18   : > { %s178_s10 = sand.u32 1, %s685_s14   ;;  %s452_s20 = sshll.u32 %s693_s16, 3 }
  0x19   : > { %s451_s11 = sshll.u32 %s178_s10, 3  ;;  %s186_s18 = scalar_lea.hbm %s872_s0, %s452_s20 }
  0x1a   : > { %s182_s24 = scalar_lea.vmem [#allocation2], %s451_s11  ;;  %s188_s26 = sshll.u32 %s186_s18, 4  ;;  %s189_s26 = int_to_ptr.hbm [resolvable:$true] %s188_s26 }
  0x1b   : > { %s190_s25 = sshll.u32 %s182_s24, 4  ;;  %p486_p8 = pnand %p494_p5, %p781_p11  ;;  %s191_s25 = int_to_ptr.vmem [resolvable:$true] %s190_s25 }
  0x1c   : > { %s179_s27 = scalar_lea.sflag [#allocation3], %s178_s10  ;;  %199 = sbr.rel (%p762_p3) target bundleno = 226 (0xe2), region = 32 }
  0x1d   : > { %488 = dma.hbm_to_vmem [thread:$0]  (!%p486_p8), %s189_s26, 128, %s191_s25, %s179_s27  }
  0x1e   : > { %s815_s28 = sand.u32 (!%p762_p3), 1, %s681_s13  }
  0x1f   : > { %s454_s30 = sshll.u32 (!%p762_p3), %s815_s28, 3  ;;  %s202_s6 = scalar_lea.sflag (!%p762_p3), [#allocation3], %s815_s28 }
  0x20   : > { %s205_s11 = scalar_lea.vmem (!%p762_p3), [#allocation2], %s454_s30 }
  0x21   : > { %664 = dma.done.wait (%p787_p12), %s202_s6, 128  }
  0x22   : > { %666 = vsyncadd (%p787_p12), %s202_s6, 4294967168 }
  0x23   : > { %668 = dma.done.wait (%p754_p1), [#allocation6], 256  }
  0x24   : > { %670 = vsyncadd (%p754_p1), [#allocation6], 4294967040  ;;  %v472_v0 = vld [vmem:[#allocation5 + $0x8] sm:$0xff]  ;;  %v471_v1 = vld [vmem:[#allocation5] sm:$0xff]  ;;  %vm263_vm0 = vcmask 261120   ;;  %s468_s19 = sshll.u32 %s689_s15, 3 }
  0x25   : > { %273 = vmatpush.bf16.msra.mxu0 %v472_v0  ;;  %v241_v2 = vld [vmem:[%s205_s11] sm:$0xff]  ;;  %s337_s20 = scalar_lea.hbm %s875_s3, %s468_s19  ;;  %s236_s21 = scalar_lea.vmem [#allocation7], %s454_s30 }
  0x26   : > { %v242_v3 = vpack.c.bf16 %v241_v2, %v241_v2  ;;  %v548_v4 = vld [vmem:[%s874_s2] ss:$0 sm:$0xff]  ;;  %s339_s22 = sshll.u32 %s236_s21, 4  ;;  %s341_s18 = sshll.u32 %s337_s20, 4  ;;  %s340_s22 = int_to_ptr.vmem [resolvable:$true] %s339_s22  ;;  %s342_s18 = int_to_ptr.hbm [resolvable:$true] %s341_s18 }
  0x27   : > { %s326_s15 = scalar_lea.sflag [#allocation4], %s815_s28  ;;  %s625_s24 = sshra.s32 %s342_s18, 4  ;;  %s626_s24 = int_to_ptr.hbm [resolvable:$true] %s625_s24 }
  0x28   : > { %s627_s25 = scalar_lea.hbm %s626_s24, 8  ;;  %s631_s30 = scalar_lea.hbm %s875_s3, 16 }
  0x29   : > { %274 = vmatpush.bf16.msra.mxu0 %v471_v1  ;;  %p628_p1 = scmp.ne.s32.totalorder %s626_s24, %s627_s25  ;;  %p632_p10 = scmp.lt.s32.totalorder %s626_s24, %s875_s3 }
  0x2a   : > { %p633_p11 = scmp.lt.s32.totalorder %s631_s30, %s627_s25 }
  0x2b   : > { %p629_p3 = pnand %p628_p1, %p793_p4 }
  0x2c   : > { %465 = vmatmul.msk.bf16.vlgmr.msra.gmra.mxu0 %vm263_vm0, %v242_v3  ;;  %p634_p12 = por %p633_p11, %p632_p10 }
  0x2d   : > { %p630_p9 = pneg %p629_p3 }
  0x2f   : > { %p635_p13 = pnand %p634_p12, %p630_p9 }
  0xa9   : > { %v276_v5 = vpop.f32.mrf.mxu0 }
  0xaa   : > { %v277_v6 = vadd.f32 %v548_v4, %v276_v5 }
  0xac   : > { %v281_v7 = vmul.f32 0.70710677, %v277_v6  ;;  %v280_v44 = vmul.f32 0.5, %v277_v6 }
  0xae   : > { %v282_v8 = vmul.f32 %v281_v7, %v281_v7 }
  0xb0   : > { %v283_v9 = vmin.f32 %v282_v8, 16.0 }
  0xb1   : > { %v278_v10 = vpop.f32.mrf.mxu0 }
  0xb2   : > { %v284_v11 = vmul.f32 2.1237322e-06, %v283_v9  ;;  %v295_v12 = vmul.f32 3.8918573e-05, %v283_v9 }
  0xb4   : > { %v285_v13 = vadd.f32 0.00028619796, %v284_v11  ;;  %v296_v14 = vadd.f32 0.001143296, %v295_v12 }
  0xb6   : > { %v286_v15 = vmul.f32 %v285_v13, %v283_v9  ;;  %v297_v16 = vmul.f32 %v296_v14, %v283_v9 }
  0xb8   : > { %v298_v17 = vadd.f32 0.014752088, %v297_v16  ;;  %v287_v18 = vadd.f32 0.0036580483, %v286_v15 }
  0xba   : > { %v299_v19 = vmul.f32 %v298_v17, %v283_v9  ;;  %v288_v21 = vmul.f32 %v287_v18, %v283_v9 }
  0xbc   : > { %v300_v20 = vadd.f32 0.112945676, %v299_v19  ;;  %v289_v24 = vadd.f32 0.05243302, %v288_v21 }
  0xbe   : > { %v301_v22 = vmul.f32 %v300_v20, %v283_v9  ;;  %v290_v27 = vmul.f32 %v289_v24, %v283_v9 }
  0xc0   : > { %v302_v23 = vadd.f32 0.4994258, %v301_v22  ;;  %v291_v28 = vadd.f32 0.18741608, %v290_v27 }
  0xc2   : > { %v303_v25 = vmul.f32 %v302_v23, %v283_v9  ;;  %v292_v30 = vmul.f32 %v291_v28, %v283_v9 }
  0xc4   : > { %v304_v26 = vadd.f32 1.0, %v303_v25  ;;  %v293_v34 = vadd.f32 1.1283791, %v292_v30 }
  0xc6   : > { %549 = vrcp.f32 %v304_v26  ;;  %v316_v33 = vand.u32 2147483648, %v304_v26  ;;  %v314_v36 = vand.u32 2147483647, %v304_v26  ;;  %vm310_vm2 = vweird.f32 %v304_v26 }
  0xc7   : > { %v294_v39 = vmul.f32 %v293_v34, %v281_v7 }
  0xc8   : > { %v317_v38 = vor.u32 1.1754944e-38, %v316_v33  ;;  %vm315_vm4 = vcmp.eq.f32.partialorder %v314_v36, 8.507059e+37 }
  0xcc   : > { %v550_v29 = vpop.eup %549 }
  0xcd   : > { %v306_v31 = vmul.f32 %v550_v29, %v304_v26  ;;  %vm311_vm1 = vweird.f32 %v550_v29 }
  0xce   : > { %vm312_vm3 = vmor %vm310_vm2, %vm311_vm1 }
  0xcf   : > { %v307_v32 = vsub.f32 1.0, %v306_v31 }
  0xd1   : > { %v308_v35 = vmul.f32 %v550_v29, %v307_v32 }
  0xd3   : > { %v309_v37 = vadd.f32 %v550_v29, %v308_v35 }
  0xd5   : > { %v313_v40 = vsel %vm312_vm3, %v550_v29, %v309_v37 }
  0xd6   : > { %v318_v41 = vsel %vm315_vm4, %v317_v38, %v313_v40 }
  0xd7   : > { %v319_v42 = vmul.f32 %v318_v41, %v294_v39 }
  0xd9   : > { %v466_v43 = vclamps-f32 %v319_v42, 1.0 }
  0xdb   : > { %v322_v45 = vadd.f32 1.0, %v466_v43 }
  0xdd   : > { %v323_v46 = vmul.f32 %v322_v45, %v280_v44 }
  0xdf   : > { %324 = vst [vmem:[%s236_s21] sm:$0xff] %v323_v46 }
  0xe0   : > { %638 = shalt.err (!%p635_p13)
}
  0xe1   : > { %479 = dma.vmem_to_hbm [thread:$0]  (%p793_p4), %s340_s22, 128, %s342_s18, %s326_s15  }
  0xe2 PF: > { %s353_s28 = sand.u32 1, %s677_s12   ;;  %p490_p0 = pnand %p450_p6, %p801_p7 }
  0xe3   : > { %s354_s23 = scalar_lea.sflag [#allocation4], %s353_s28 }
  0xe4   : > { %p491_p2 = pneg %p490_p0 }
  0xe6   : > { %672 = dma.done.wait (%p491_p2), %s354_s23, 128  }
  0xe7   : > { %674 = vsyncadd (%p491_p2), %s354_s23, 4294967168  ;;  %s20_s17 = sadd.s32 1, %s697_s17   ;;  %s882_s12 = smov %s681_s13 }
  0xe8   : > { %p17_p5 = scmp.ge.s32.totalorder %s20_s17, 4   ;;  %s883_s13 = smov %s685_s14 }
  0xe9   : > { %s884_s14 = smov %s799_s8  ;;  %s885_s15 = smov %s693_s16 }
  0xea   : > { %s886_s16 = smov %s888_s29  ;;  %19 = sbr.rel (!%p17_p5) target bundleno = 7 (0x7), region = 85 }
  0xef   :  { %360 = vsyncpa [#allocation3], 1 }
  0xf0   :  { %362 = vsyncpa [#allocation3 + $0x1], 1 }
  0xf1   :  { %363 = vsyncpa [#allocation6], 1 }
  0xf2   :  { %364 = vsyncpa [#allocation4], 1 }
  0xf3   :  { %366 = vsyncpa [#allocation4 + $0x1], 1 }

</bundles_post_ra>
